<compile_context>
chip_gen: v6e
topology: v6e:2x2x1
jax: 0.10.0
libtpu: 0.0.40
codegen_flags: <defaults>
</compile_context>

<pallas_src>
import jax
import jax.numpy as jnp
import numpy as np
from jax.experimental import pallas as pl
from jax.experimental.pallas import tpu as pltpu


def _stats_kernel(w_ref, x_ref, sum_ref, sq_ref):
    """Accumulate per-channel sum / sum-of-squares of u = w_cat @ x_cat."""
    @pl.when(pl.program_id(1) == 0)
    def _():
        sum_ref[...] = jnp.zeros_like(sum_ref)
        sq_ref[...] = jnp.zeros_like(sq_ref)

    u = jnp.dot(w_ref[...], x_ref[...].astype(jnp.float32),
                preferred_element_type=jnp.float32,
                precision=jax.lax.Precision.HIGHEST)
    sum_ref[...] += jnp.sum(u, axis=1, keepdims=True)
    sq_ref[...] += jnp.sum(u * u, axis=1, keepdims=True)


def _apply_kernel(w_ref, ad_ref, x_ref, x3_ref, o_ref):
    """out = a * (w_cat @ x_cat) + x3 + d  (fused conv + BN + residual adds)."""
    u = jnp.dot(w_ref[...], x_ref[...].astype(jnp.float32),
                preferred_element_type=jnp.float32,
                precision=jax.lax.Precision.HIGHEST)
    a = ad_ref[:, 0:1]
    d = ad_ref[:, 1:2]
    o_ref[...] = (a * u + (x3_ref[...].astype(jnp.float32) + d)).astype(o_ref.dtype)


def fused_forward(x1, x2, x3, w1, b1, w2, b2, gamma, beta,
                  *, eps=1e-5, tile_lanes=8192):
    """x1,x2: (N,3,H,W); x3: (N,8,H+2,W+2); returns (N,8,H+2,W+2)."""
    f32 = jnp.float32
    n, cin, h, w = x1.shape
    cout = w1.shape[0]
    hp, wp = h + 2, w + 2
    s_img = hp * wp

    cin2 = 2 * cin
    cin_pad = ((cin2 + 7) // 8) * 8          # merged channel dim padded to 8 sublanes

    # Adaptive spatial tiling: full-image block (no pad) when it fits, else
    # 128-aligned tiles sized ~s_img/num_tiles with a small zero tail.
    if s_img <= tile_lanes:
        tile = s_img
    else:
        nt = -(-s_img // tile_lanes)
        tile = (-(-s_img // (nt * 128))) * 128
    num_tiles = -(-s_img // tile)
    s_pad = num_tiles * tile

    # Conv inputs: spatial pad (conv padding=1), merge x1|x2 on channels, pad to 8.
    def pad_img(x):
        return jnp.pad(x.astype(f32), ((0, 0), (0, 0), (1, 1), (1, 1)))

    xc = jnp.concatenate([pad_img(x1), pad_img(x2)], axis=1)          # (n, 2*cin, hp, wp)
    xc = jnp.pad(xc, ((0, 0), (0, cin_pad - cin2), (0, 0), (0, 0)))   # (n, cin_pad, hp, wp)
    xc = xc.reshape(n, cin_pad, s_img)
    x3f = x3.astype(f32).reshape(n, cout, s_img)
    if s_pad > s_img:
        xc = jnp.pad(xc, ((0, 0), (0, 0), (0, s_pad - s_img)))
        x3f = jnp.pad(x3f, ((0, 0), (0, 0), (0, s_pad - s_img)))

    w_cat = jnp.concatenate([w1, w2], axis=1).astype(f32)             # (cout, 2*cin)
    w_cat = jnp.pad(w_cat, ((0, 0), (0, cin_pad - cin2)))             # (cout, cin_pad)
    b12 = (b1 + b2).astype(f32)

    const_w = pl.BlockSpec((cout, cin_pad), lambda i, t: (0, 0))

    # ---------------- pass 1: per-image partial per-channel stats of u --------
    sum_p, sq_p = pl.pallas_call(
        _stats_kernel,
        out_shape=(jax.ShapeDtypeStruct((n, cout, 1), f32),
                   jax.ShapeDtypeStruct((n, cout, 1), f32)),
        grid=(n, num_tiles),
        in_specs=[
            const_w,                                                   # w_cat
            pl.BlockSpec((None, cin_pad, tile), lambda i, t: (i, 0, t)),  # x_cat
        ],
        out_specs=(pl.BlockSpec((None, cout, 1), lambda i, t: (i, 0, 0)),
                   pl.BlockSpec((None, cout, 1), lambda i, t: (i, 0, 0))),
        compiler_params=pltpu.CompilerParams(
            dimension_semantics=("parallel", "arbitrary")),
    )(w_cat, xc)

    # Glue: zero tail columns contribute exactly 0 to the bias-free sums, so we
    # only need to normalize by the true element count.
    count = float(n * s_img)
    sum_u = jnp.sum(sum_p[:, :, 0], axis=0)
    sq_u = jnp.sum(sq_p[:, :, 0], axis=0)
    mean_u = sum_u / count
    var = jnp.maximum(sq_u / count - mean_u * mean_u, 0.0)   # biased (training BN)
    mean = mean_u + b12                                      # mean of v3
    scale = gamma.astype(f32) * jax.lax.rsqrt(var + eps)
    a = 2.0 + scale                                          # out = a*v3 + x3 + shift
    shift = beta.astype(f32) - scale * mean
    d = a * b12 + shift                                      # fold conv bias into shift
    ad = jnp.stack([a, d], axis=1)                           # (cout, 2) packed constants

    # ---------------- pass 2: recompute u, apply fused affine, store ----------
    out_flat = pl.pallas_call(
        _apply_kernel,
        out_shape=jax.ShapeDtypeStruct((n, cout, s_pad), x1.dtype),
        grid=(n, num_tiles),
        in_specs=[
            const_w,                                                     # w_cat
            pl.BlockSpec((cout, 2), lambda i, t: (0, 0)),                # a|d
            pl.BlockSpec((None, cin_pad, tile), lambda i, t: (i, 0, t)),  # x_cat
            pl.BlockSpec((None, cout, tile), lambda i, t: (i, 0, t)),     # x3
        ],
        out_specs=pl.BlockSpec((None, cout, tile), lambda i, t: (i, 0, t)),
        compiler_params=pltpu.CompilerParams(
            dimension_semantics=("parallel", "parallel")),
    )(w_cat, ad, xc, x3f)

    if s_pad > s_img:
        out_flat = out_flat[:, :, :s_img]
    return out_flat.reshape(n, cout, hp, wp)                 # metadata-only reshape


def reference_forward(x1, x2, x3, w1, b1, w2, b2, gamma, beta, eps=1e-5):
    def conv1x1_p1(x, w, b):
        xp = jnp.pad(x, ((0, 0), (0, 0), (1, 1), (1, 1)))
        return jnp.einsum('nchw,oc->nohw', xp, w) + b[None, :, None, None]

    v1 = conv1x1_p1(x1, w1, b1)
    v2 = conv1x1_p1(x2, w2, b2)
    v3 = v1 + v2
    mean = v3.mean(axis=(0, 2, 3))
    var = v3.var(axis=(0, 2, 3))  # biased, matches training-mode BN
    v6 = (gamma[None, :, None, None] * (v3 - mean[None, :, None, None])
          * jax.lax.rsqrt(var + eps)[None, :, None, None]
          + beta[None, :, None, None])
    return (v3 + x3) + (v3 + v6)


if __name__ == "__main__":
    key = jax.random.PRNGKey(0)
    ks = jax.random.split(key, 9)
    n, cin, cout, h, w = 2, 3, 8, 16, 16
    hp, wp = h + 2, w + 2

    x1 = jax.random.normal(ks[0], (n, cin, h, w), jnp.float32)
    x2 = jax.random.normal(ks[1], (n, cin, h, w), jnp.float32)
    # x3 taken at the conv-output shape (see TODO(synk) at top of file).
    x3 = jax.random.normal(ks[2], (n, cout, hp, wp), jnp.float32)

    w1 = 0.3 * jax.random.normal(ks[3], (cout, cin), jnp.float32)
    b1 = 0.1 * jax.random.normal(ks[4], (cout,), jnp.float32)
    w2 = 0.3 * jax.random.normal(ks[5], (cout, cin), jnp.float32)
    b2 = 0.1 * jax.random.normal(ks[6], (cout,), jnp.float32)
    gamma = 1.0 + 0.2 * jax.random.normal(ks[7], (cout,), jnp.float32)
    beta = 0.1 * jax.random.normal(ks[8], (cout,), jnp.float32)

    fwd = jax.jit(fused_forward)
    out = fwd(x1, x2, x3, w1, b1, w2, b2, gamma, beta)
    out = jax.block_until_ready(out)

    ref = reference_forward(x1, x2, x3, w1, b1, w2, b2, gamma, beta)
    np.testing.assert_allclose(np.asarray(out), np.asarray(ref),
                               rtol=2e-3, atol=2e-3)
    print("KERNEL_OK")
</pallas_src>

<mosaic_0001>
module attributes {stable_mosaic.version = 11 : i64} {
  func.func @_stats_kernel(%arg0: i32, %arg1: i32, %arg2: memref<8x8xf32, #tpu.memory_space<vmem>>, %arg3: memref<1x8x324xf32, #tpu.memory_space<vmem>>, %arg4: memref<1x8x1xf32, #tpu.memory_space<vmem>>, %arg5: memref<1x8x1xf32, #tpu.memory_space<vmem>>) attributes {dimension_semantics = [#tpu.dimension_semantics<parallel>, #tpu.dimension_semantics<arbitrary>], iteration_bounds = array<i64: 2, 1>, scalar_prefetch = 0 : i64, scratch_operands = 0 : i64, tpu.core_type = #tpu.core_type<tc>, window_params = [{pipeline_mode = #tpu.pipeline_mode<synchronous>, transform_indices = @transform_0, window_bounds = array<i64: 8, 8>}, {transform_indices = @transform_1, window_bounds = array<i64: 1, 8, 324>}, {transform_indices = @transform_2, window_bounds = array<i64: 1, 8, 1>}, {transform_indices = @transform_3, window_bounds = array<i64: 1, 8, 1>}]} {
    %c0_i32 = arith.constant 0 : i32
    %0 = arith.cmpi eq, %arg1, %c0_i32 : i32
    %1 = arith.extui %0 : i1 to i32
    %c0_i32_0 = arith.constant 0 : i32
    %2 = arith.cmpi ne, %1, %c0_i32_0 : i32
    scf.if %2 {
      %cst_19 = arith.constant 0.000000e+00 : f32
      %24 = vector.broadcast %cst_19 : f32 to vector<8x1xf32>
      %c0_20 = arith.constant 0 : index
      %c0_21 = arith.constant 0 : index
      %c0_22 = arith.constant 0 : index
      %25 = vector.load %arg4[%c0_20, %c0_21, %c0_22] : memref<1x8x1xf32, #tpu.memory_space<vmem>>, vector<1x8x1xf32>
      %26 = vector.shape_cast %25 : vector<1x8x1xf32> to vector<8x1xf32>
      %27 = vector.shape_cast %24 : vector<8x1xf32> to vector<1x8x1xf32>
      tpu.vector_store %arg4[%c0_20, %c0_21, %c0_22], %27 {strides = array<i32>} : memref<1x8x1xf32, #tpu.memory_space<vmem>>, vector<1x8x1xf32>,
      %cst_23 = arith.constant 0.000000e+00 : f32
      %28 = vector.broadcast %cst_23 : f32 to vector<8x1xf32>
      %c0_24 = arith.constant 0 : index
      %c0_25 = arith.constant 0 : index
      %c0_26 = arith.constant 0 : index
      %29 = vector.load %arg5[%c0_24, %c0_25, %c0_26] : memref<1x8x1xf32, #tpu.memory_space<vmem>>, vector<1x8x1xf32>
      %30 = vector.shape_cast %29 : vector<1x8x1xf32> to vector<8x1xf32>
      %31 = vector.shape_cast %28 : vector<8x1xf32> to vector<1x8x1xf32>
      tpu.vector_store %arg5[%c0_24, %c0_25, %c0_26], %31 {strides = array<i32>} : memref<1x8x1xf32, #tpu.memory_space<vmem>>, vector<1x8x1xf32>,
    } else {
    }
    %c0 = arith.constant 0 : index
    %c0_1 = arith.constant 0 : index
    %3 = vector.load %arg2[%c0, %c0_1] : memref<8x8xf32, #tpu.memory_space<vmem>>, vector<8x8xf32>
    %c0_2 = arith.constant 0 : index
    %c0_3 = arith.constant 0 : index
    %c0_4 = arith.constant 0 : index
    %4 = vector.load %arg3[%c0_2, %c0_3, %c0_4] : memref<1x8x324xf32, #tpu.memory_space<vmem>>, vector<1x8x324xf32>
    %5 = vector.shape_cast %4 : vector<1x8x324xf32> to vector<8x324xf32>
    %cst = arith.constant dense<0.000000e+00> : vector<8x324xf32>
    %6 = tpu.matmul %3, %5, %cst {dimension_numbers = #tpu.dot_dimension_numbers<[1], [0], [0], [1], [0, 0, 1, 1], [], []>, precision = #tpu.contract_precision<fp32>} : vector<8x8xf32>, vector<8x324xf32>, vector<8x324xf32> -> vector<8x324xf32>
    %c0_5 = arith.constant 0 : index
    %c0_6 = arith.constant 0 : index
    %c0_7 = arith.constant 0 : index
    %7 = vector.load %arg4[%c0_5, %c0_6, %c0_7] : memref<1x8x1xf32, #tpu.memory_space<vmem>>, vector<1x8x1xf32>
    %8 = vector.shape_cast %7 : vector<1x8x1xf32> to vector<8x1xf32>
    %cst_8 = arith.constant dense<0.000000e+00> : vector<8xf32>
    %9 = vector.multi_reduction <add>, %6, %cst_8 [1] : vector<8x324xf32> to vector<8xf32>
    %10 = vector.shape_cast %9 : vector<8xf32> to vector<8x1xf32>
    %11 = arith.addf %8, %10 : vector<8x1xf32>
    %c0_9 = arith.constant 0 : index
    %c0_10 = arith.constant 0 : index
    %c0_11 = arith.constant 0 : index
    %12 = vector.load %arg4[%c0_9, %c0_10, %c0_11] : memref<1x8x1xf32, #tpu.memory_space<vmem>>, vector<1x8x1xf32>
    %13 = vector.shape_cast %12 : vector<1x8x1xf32> to vector<8x1xf32>
    %14 = vector.shape_cast %11 : vector<8x1xf32> to vector<1x8x1xf32>
    tpu.vector_store %arg4[%c0_9, %c0_10, %c0_11], %14 {strides = array<i32>} : memref<1x8x1xf32, #tpu.memory_space<vmem>>, vector<1x8x1xf32>,
    %c0_12 = arith.constant 0 : index
    %c0_13 = arith.constant 0 : index
    %c0_14 = arith.constant 0 : index
    %15 = vector.load %arg5[%c0_12, %c0_13, %c0_14] : memref<1x8x1xf32, #tpu.memory_space<vmem>>, vector<1x8x1xf32>
    %16 = vector.shape_cast %15 : vector<1x8x1xf32> to vector<8x1xf32>
    %17 = arith.mulf %6, %6 : vector<8x324xf32>
    %cst_15 = arith.constant dense<0.000000e+00> : vector<8xf32>
    %18 = vector.multi_reduction <add>, %17, %cst_15 [1] : vector<8x324xf32> to vector<8xf32>
    %19 = vector.shape_cast %18 : vector<8xf32> to vector<8x1xf32>
    %20 = arith.addf %16, %19 : vector<8x1xf32>
    %c0_16 = arith.constant 0 : index
    %c0_17 = arith.constant 0 : index
    %c0_18 = arith.constant 0 : index
    %21 = vector.load %arg5[%c0_16, %c0_17, %c0_18] : memref<1x8x1xf32, #tpu.memory_space<vmem>>, vector<1x8x1xf32>
    %22 = vector.shape_cast %21 : vector<1x8x1xf32> to vector<8x1xf32>
    %23 = vector.shape_cast %20 : vector<8x1xf32> to vector<1x8x1xf32>
    tpu.vector_store %arg5[%c0_16, %c0_17, %c0_18], %23 {strides = array<i32>} : memref<1x8x1xf32, #tpu.memory_space<vmem>>, vector<1x8x1xf32>,
    return
  }
  func.func @transform_0(%arg0: i32, %arg1: i32) -> (i32, i32) {
    %c0_i32 = arith.constant 0 : i32
    %c0_i32_0 = arith.constant 0 : i32
    %c0_i32_1 = arith.constant 0 : i32
    return %c0_i32, %c0_i32_0 : i32, i32
  }
  func.func @transform_1(%arg0: i32, %arg1: i32) -> (i32, i32, i32) {
    %c0_i32 = arith.constant 0 : i32
    %c0_i32_0 = arith.constant 0 : i32
    return %arg0, %c0_i32, %arg1 : i32, i32, i32
  }
  func.func @transform_2(%arg0: i32, %arg1: i32) -> (i32, i32, i32) {
    %c0_i32 = arith.constant 0 : i32
    %c0_i32_0 = arith.constant 0 : i32
    %c0_i32_1 = arith.constant 0 : i32
    return %arg0, %c0_i32, %c0_i32_0 : i32, i32, i32
  }
  func.func @transform_3(%arg0: i32, %arg1: i32) -> (i32, i32, i32) {
    %c0_i32 = arith.constant 0 : i32
    %c0_i32_0 = arith.constant 0 : i32
    %c0_i32_1 = arith.constant 0 : i32
    return %arg0, %c0_i32, %c0_i32_0 : i32, i32, i32
  }
}

module attributes {stable_mosaic.version = 11 : i64} {
  func.func @_apply_kernel(%arg0: i32, %arg1: i32, %arg2: memref<8x8xf32, #tpu.memory_space<vmem>>, %arg3: memref<8x2xf32, #tpu.memory_space<vmem>>, %arg4: memref<1x8x324xf32, #tpu.memory_space<vmem>>, %arg5: memref<1x8x324xf32, #tpu.memory_space<vmem>>, %arg6: memref<1x8x324xf32, #tpu.memory_space<vmem>>) attributes {dimension_semantics = [#tpu.dimension_semantics<parallel>, #tpu.dimension_semantics<parallel>], iteration_bounds = array<i64: 2, 1>, scalar_prefetch = 0 : i64, scratch_operands = 0 : i64, tpu.core_type = #tpu.core_type<tc>, window_params = [{pipeline_mode = #tpu.pipeline_mode<synchronous>, transform_indices = @transform_0, window_bounds = array<i64: 8, 8>}, {pipeline_mode = #tpu.pipeline_mode<synchronous>, transform_indices = @transform_1, window_bounds = array<i64: 8, 2>}, {transform_indices = @transform_2, window_bounds = array<i64: 1, 8, 324>}, {transform_indices = @transform_3, window_bounds = array<i64: 1, 8, 324>}, {transform_indices = @transform_4, window_bounds = array<i64: 1, 8, 324>}]} {
    %c0 = arith.constant 0 : index
    %c0_0 = arith.constant 0 : index
    %0 = vector.load %arg2[%c0, %c0_0] : memref<8x8xf32, #tpu.memory_space<vmem>>, vector<8x8xf32>
    %c0_1 = arith.constant 0 : index
    %c0_2 = arith.constant 0 : index
    %c0_3 = arith.constant 0 : index
    %1 = vector.load %arg4[%c0_1, %c0_2, %c0_3] : memref<1x8x324xf32, #tpu.memory_space<vmem>>, vector<1x8x324xf32>
    %2 = vector.shape_cast %1 : vector<1x8x324xf32> to vector<8x324xf32>
    %cst = arith.constant dense<0.000000e+00> : vector<8x324xf32>
    %3 = tpu.matmul %0, %2, %cst {dimension_numbers = #tpu.dot_dimension_numbers<[1], [0], [0], [1], [0, 0, 1, 1], [], []>, precision = #tpu.contract_precision<fp32>} : vector<8x8xf32>, vector<8x324xf32>, vector<8x324xf32> -> vector<8x324xf32>
    %c0_4 = arith.constant 0 : index
    %c0_5 = arith.constant 0 : index
    %4 = vector.load %arg3[%c0_4, %c0_5] : memref<8x2xf32, #tpu.memory_space<vmem>>, vector<8x1xf32>
    %c0_6 = arith.constant 0 : index
    %c1 = arith.constant 1 : index
    %5 = vector.load %arg3[%c0_6, %c1] : memref<8x2xf32, #tpu.memory_space<vmem>>, vector<8x1xf32>
    %6 = vector.broadcast %4 : vector<8x1xf32> to vector<8x324xf32>
    %7 = arith.mulf %6, %3 : vector<8x324xf32>
    %c0_7 = arith.constant 0 : index
    %c0_8 = arith.constant 0 : index
    %c0_9 = arith.constant 0 : index
    %8 = vector.load %arg5[%c0_7, %c0_8, %c0_9] : memref<1x8x324xf32, #tpu.memory_space<vmem>>, vector<1x8x324xf32>
    %9 = vector.shape_cast %8 : vector<1x8x324xf32> to vector<8x324xf32>
    %10 = vector.broadcast %5 : vector<8x1xf32> to vector<8x324xf32>
    %11 = arith.addf %9, %10 : vector<8x324xf32>
    %12 = arith.addf %7, %11 : vector<8x324xf32>
    %c0_10 = arith.constant 0 : index
    %c0_11 = arith.constant 0 : index
    %c0_12 = arith.constant 0 : index
    %13 = vector.load %arg6[%c0_10, %c0_11, %c0_12] : memref<1x8x324xf32, #tpu.memory_space<vmem>>, vector<1x8x324xf32>
    %14 = vector.shape_cast %13 : vector<1x8x324xf32> to vector<8x324xf32>
    %15 = vector.shape_cast %12 : vector<8x324xf32> to vector<1x8x324xf32>
    tpu.vector_store %arg6[%c0_10, %c0_11, %c0_12], %15 {strides = array<i32>} : memref<1x8x324xf32, #tpu.memory_space<vmem>>, vector<1x8x324xf32>,
    return
  }
  func.func @transform_0(%arg0: i32, %arg1: i32) -> (i32, i32) {
    %c0_i32 = arith.constant 0 : i32
    %c0_i32_0 = arith.constant 0 : i32
    %c0_i32_1 = arith.constant 0 : i32
    return %c0_i32, %c0_i32_0 : i32, i32
  }
  func.func @transform_1(%arg0: i32, %arg1: i32) -> (i32, i32) {
    %c0_i32 = arith.constant 0 : i32
    %c0_i32_0 = arith.constant 0 : i32
    %c0_i32_1 = arith.constant 0 : i32
    return %c0_i32, %c0_i32_0 : i32, i32
  }
  func.func @transform_2(%arg0: i32, %arg1: i32) -> (i32, i32, i32) {
    %c0_i32 = arith.constant 0 : i32
    %c0_i32_0 = arith.constant 0 : i32
    return %arg0, %c0_i32, %arg1 : i32, i32, i32
  }
  func.func @transform_3(%arg0: i32, %arg1: i32) -> (i32, i32, i32) {
    %c0_i32 = arith.constant 0 : i32
    %c0_i32_0 = arith.constant 0 : i32
    return %arg0, %c0_i32, %arg1 : i32, i32, i32
  }
  func.func @transform_4(%arg0: i32, %arg1: i32) -> (i32, i32, i32) {
    %c0_i32 = arith.constant 0 : i32
    %c0_i32_0 = arith.constant 0 : i32
    return %arg0, %c0_i32, %arg1 : i32, i32, i32
  }
}

</mosaic_0001>

<bundles_post_ra>
// kernel: fused_forward.3
= control target key start
LH: loop header
LB: loop body
LE: loop exit
PB: predicated region body
PF: predicated region fallthrough
CT: control target
= control target key end

     0   :  { %s1459_s15 = smov 0   ;;  %s1461_s16 = smov 0   ;;  %s1549_s0 = inlined_call_operand.vmem [shape: f32[8,8], index: 0, kind: input, shape index: {}]   ;;  %s1550_s1 = inlined_call_operand.vmem [shape: f32[8,2], index: 1, kind: input, shape index: {}]   ;;  %s1551_s2 = inlined_call_operand.vmem [shape: f32[2,8,324], index: 2, kind: input, shape index: {}]   ;;  %s1552_s3 = inlined_call_operand.vmem [shape: f32[2,8,324], index: 3, kind: input, shape index: {}]   ;;  %s1553_s4 = inlined_call_operand.vmem [shape: f32[2,8,324], index: 4, kind: output, shape index: {}]  }
   0x1   :  { %s1463_s17 = smov 0  }
   0x2 LB: > { %s26_s18 = sadd.s32 1, %s1424_s16  ;;  %p1327_p0 = scmp.ge.s32.totalorder %s1428_s17, 1  ;;  %s1428_s17 = sphi %s1463_s17, %s14_s17   ;;  %s1424_s16 = sphi %s1461_s16, %s1555_s16   ;;  %s1420_s15 = sphi %s1459_s15, %s1554_s15  }
   0x3   : > { %p28_p1 = scmp.ge.s32.totalorder %s26_s18, 2  ;;  %p200_p2 = scmp.lt.s32.totalorder %s1428_s17, 3 }
   0x5   : > { %s1557_s18 = smov (%p28_p1, %s26_s18), 0  ;;  %p201_p3 = pnand %p1327_p0, %p200_p2 }
   0x6   : > { %p244_p4 = scmp.lt.s32.totalorder (!%p201_p3), %s1420_s15, 1 }
   0x7   : > { %204 = sbr.rel (%p201_p3) target bundleno = 251 (0xfb), region = 36 }
   0xc   : > { %v273_v0 = vld [vmem:[%s1549_s0] sm:$0xff]  ;;  %vm277_vm0 = vcmask 64512   ;;  %v1430_v1 = vmov 0.0   ;;  %s1559_s15 = smov (!%p244_p4, %s1420_s15), 1  ;;  %v1431_v5 = vmov 0   ;;  %v1432_v11 = vmov 1  }
   0xd   : > { %347 = vmatprep.mubr.f32.mxu0 %v1430_v1  ;;  %v279_v2 = vsel %vm277_vm0, %v273_v0, 0  ;;  %433 = vmatprep.mubr.f32.mxu1 %v1430_v1  ;;  %v1192_v3 = vld [vmem:[%s1550_s1] sm:$0xff]  ;;  %s1487_s23 = smul.u32 24, %s1559_s15  ;;  %vm1433_vm1 = vmmov 0   ;;  %vm1216_vm2 = vcmask 556032  }
   0xe   : > { %v1485_v4 = vand.u32 4294901760, %v279_v2  ;;  %1404 = vset.pattern.permute.xlu0 %v1431_v5 }
   0xf   : > { %1195 = vperm.xlu0 %1404, %v1192_v3   ;;  %s251_s26 = scalar_lea.vmem %s1551_s2, %s1487_s23  ;;  %s1531_s29 = scalar_lea.vmem %s1552_s3, %s1487_s23 }
  0x10   : > { %v349_v6 = vsub.f32 %v279_v2, %v1485_v4  ;;  %v275_v8 = vld [vmem:[%s251_s26 + $0x8] sm:$0xff]  ;;  %v274_v9 = vld [vmem:[%s251_s26] sm:$0xff]  ;;  %v276_v10 = vld [vmem:[%s251_s26 + $0x10] sm:$0xff]  ;;  %s271_s6 = scalar_lea.vmem %s1553_s4, %s1487_s23 }
  0x11   : > { %v311_v12 = vand.u32 4294901760, %v275_v8  ;;  %v313_v13 = vand.u32 4294901760, %v274_v9  ;;  %v777_v15 = vand.u32 4294901760, %v276_v10  ;;  %v1201_v47 = vld [vmem:[%s1531_s29] sm:$0xff]  ;;  %v1202_v51 = vld [vmem:[%s1531_s29 + $0x8] sm:$0xff] }
  0x12   : > { %v1494_v7 = vand.u32 4294901760, %v349_v6 }
  0x13   : > { %1405 = vset.pattern.permute.xlu0 %v1432_v11  ;;  %312 = vmatprep.subr.mxu0 %v311_v12  ;;  %v390_v17 = vsub.f32 %v275_v8, %v311_v12  ;;  %v396_v18 = vsub.f32 %v274_v9, %v313_v13  ;;  %v854_v21 = vsub.f32 %v276_v10, %v777_v15  ;;  %v1203_v9 = vld [vmem:[%s1531_s29 + $0x10] sm:$0xff] }
  0x14   : > { %v351_v14 = vsub.f32 %v349_v6, %v1494_v7  ;;  %1205 = vperm.xlu0 %1405, %v1192_v3   ;;  %314 = vmatpush1.msra.mxu0 %v313_v13 }
  0x15   : > { %v391_v19 = vand.u32 4294901760, %v390_v17  ;;  %473 = vmatprep.subr.mxu0 %v390_v17  ;;  %v397_v20 = vand.u32 4294901760, %v396_v18  ;;  %v855_v26 = vand.u32 4294901760, %v854_v21 }
  0x16   : > { %v352_v16 = vand.u32 4294901760, %v351_v14 }
  0x17   : > { %v392_v22 = vsub.f32 %v390_v17, %v391_v19  ;;  %v398_v23 = vsub.f32 %v396_v18, %v397_v20  ;;  %v856_v27 = vsub.f32 %v854_v21, %v855_v26 }
  0x18   : > { %353 = vmatmul.mubr.f32.vlgmr.msra.gmra.mxu0 %v352_v16 }
  0x19   : > { %476 = vmatpush1.msra.mxu0 %v396_v18  ;;  %509 = vmatprep.mubr.f32.mxu0 %v1430_v1  ;;  %v393_v24 = vand.u32 4294901760, %v392_v22  ;;  %v399_v25 = vand.u32 4294901760, %v398_v23  ;;  %v857_v28 = vand.u32 4294901760, %v856_v27 }
  0x1a   : > { %627 = vmatprep.subr.mxu0 %v391_v19 }
  0x1b   : > { %394 = vmatprep.subr.mxu1 %v393_v24 }
  0x1c   : > { %512 = vmatmul.mubr.f32.vlgmr.msra.gmra.mxu0 %v349_v6  ;;  %400 = vmatpush1.msra.mxu1 %v399_v25 }
  0x1d   : > { %631 = vmatpush1.msra.mxu0 %v397_v20  ;;  %664 = vmatprep.mubr.f32.mxu0 %v1430_v1 }
  0x1e   : > { %1345 = vmatprep.subr.mxu0 %v1430_v1  ;;  %435 = vmatmul.mubr.f32.vlgmr.msra.gmra.mxu1 %v1485_v4 }
  0x1f   : > { %549 = vmatprep.subr.mxu1 %v311_v12  ;;  %584 = vmatprep.mubr.f32.mxu1 %v1430_v1 }
  0x20   : > { %551 = vmatpush1.msra.mxu1 %v313_v13  ;;  %666 = vmatmul.mubr.f32.vlgmr.msra.gmra.mxu0 %v1485_v4 }
  0x21   : > { %703 = vmatprep.subr.mxu1 %v311_v12  ;;  %1346 = vmatpush3.msra.mxu0 %v777_v15 }
  0x22   : > { %1347 = vmatprep.mubr.msk.f32.mxu0 %vm1433_vm1, %v1430_v1  ;;  %588 = vmatmul.mubr.f32.vlgmr.msra.gmra.mxu1 %v1494_v7 }
  0x23   : > { %1355 = vmatprep.subr.mxu0 %v1430_v1  ;;  %705 = vmatpush1.msra.mxu1 %v313_v13 }
  0x24   : > { %738 = vmatprep.mubr.f32.mxu1 %v1430_v1  ;;  %1350 = vmatprep.subr.mxu1 %v1430_v1 }
  0x25   : > { %1348 = vmatmul.mubr.f32.vlgmr.msra.gmra.mxu0 %v352_v16 }
  0x26   : > { %1356 = vmatpush3.msra.mxu0 %v854_v21  ;;  %1357 = vmatprep.mubr.msk.f32.mxu0 %vm1433_vm1, %v1430_v1 }
  0x27   : > { %740 = vmatmul.mubr.f32.vlgmr.msra.gmra.mxu1 %v1485_v4  ;;  %1365 = vmatprep.subr.mxu0 %v1430_v1 }
  0x28   : > { %1351 = vmatpush3.msra.mxu1 %v857_v28  ;;  %1352 = vmatprep.mubr.msk.f32.mxu1 %vm1433_vm1, %v1430_v1 }
  0x29   : > { %1360 = vmatprep.subr.mxu1 %v1430_v1  ;;  %1358 = vmatmul.mubr.f32.vlgmr.msra.gmra.mxu0 %v349_v6 }
  0x2a   : > { %1366 = vmatpush3.msra.mxu0 %v855_v26  ;;  %1367 = vmatprep.mubr.msk.f32.mxu0 %vm1433_vm1, %v1430_v1 }
  0x2b   : > { %1353 = vmatmul.mubr.f32.vlgmr.msra.gmra.mxu1 %v1485_v4 }
  0x2c   : > { %1361 = vmatpush3.msra.mxu1 %v777_v15  ;;  %1362 = vmatprep.mubr.msk.f32.mxu1 %vm1433_vm1, %v1430_v1 }
  0x2d   : > { %1370 = vmatprep.subr.mxu1 %v1430_v1  ;;  %1368 = vmatmul.mubr.f32.vlgmr.msra.gmra.mxu0 %v1485_v4 }
  0x2f   : > { %1363 = vmatmul.mubr.f32.vlgmr.msra.gmra.mxu1 %v1494_v7 }
  0x30   : > { %1371 = vmatpush3.msra.mxu1 %v777_v15  ;;  %1372 = vmatprep.mubr.msk.f32.mxu1 %vm1433_vm1, %v1430_v1 }
  0x33   : > { %1373 = vmatmul.mubr.f32.vlgmr.msra.gmra.mxu1 %v1485_v4 }
  0x8a   : > { %v1196_v33 = vpop.permute.xlu0 %1195 }
  0x8f   : > { %v1206_v44 = vpop.permute.xlu0 %1205 }
  0x90   : > { %v1208_v55 = vadd.f32 %v1206_v44, %v1201_v47  ;;  %v1209_v59 = vadd.f32 %v1206_v44, %v1202_v51  ;;  %v1210_v13 = vadd.f32 %v1206_v44, %v1203_v9 }
  0xd8   : > { %v354_v29 = vpop.f32.mrf.mxu0 }
  0xda   : > { %v356_v30 = vpop.f32.mrf.mxu0 }
  0xdc   : > { %v513_v31 = vpop.f32.mrf.mxu0 }
  0xde   : > { %v515_v32 = vpop.f32.mrf.mxu0  ;;  %v436_v34 = vpop.f32.mrf.mxu1 }
  0xdf   : > { %v437_v35 = vadd.f32 %v436_v34, %v354_v29 }
  0xe0   : > { %v438_v36 = vpop.f32.mrf.mxu1  ;;  %v667_v37 = vpop.f32.mrf.mxu0 }
  0xe1   : > { %v514_v38 = vadd.f32 %v513_v31, %v437_v35  ;;  %v439_v39 = vadd.f32 %v438_v36, %v356_v30 }
  0xe2   : > { %v589_v40 = vpop.f32.mrf.mxu1  ;;  %v669_v41 = vpop.f32.mrf.mxu0 }
  0xe3   : > { %v516_v42 = vadd.f32 %v515_v32, %v439_v39  ;;  %v590_v43 = vadd.f32 %v589_v40, %v514_v38 }
  0xe4   : > { %v591_v45 = vpop.f32.mrf.mxu1 }
  0xe5   : > { %v818_v46 = vpop.f32.mrf.mxu0  ;;  %v668_v48 = vadd.f32 %v667_v37, %v590_v43  ;;  %v592_v49 = vadd.f32 %v591_v45, %v516_v42 }
  0xe7   : > { %v741_v50 = vpop.f32.mrf.mxu1  ;;  %v1349_v52 = vpop.f32.mrf.mxu0  ;;  %v670_v53 = vadd.f32 %v669_v41, %v592_v49 }
  0xe8   : > { %v742_v54 = vadd.f32 %v741_v50, %v668_v48 }
  0xe9   : > { %v743_v56 = vpop.f32.mrf.mxu1  ;;  %v968_v57 = vpop.f32.mrf.mxu0 }
  0xea   : > { %v1198_v58 = vmul.f32 %v1196_v33, %v742_v54  ;;  %v744_v60 = vadd.f32 %v743_v56, %v670_v53 }
  0xeb   : > { %v894_v61 = vpop.f32.mrf.mxu1  ;;  %v1359_v62 = vpop.f32.mrf.mxu0 }
  0xec   : > { %v1211_v63 = vadd.f32 %v1208_v55, %v1198_v58  ;;  %v1199_v0 = vmul.f32 %v1196_v33, %v744_v60  ;;  %v895_v1 = vadd.f32 %v894_v61, %v818_v46 }
  0xed   : > { %v1354_v2 = vpop.f32.mrf.mxu1  ;;  %v1116_v3 = vpop.f32.mrf.mxu0 }
  0xee   : > { %1214 = vst [vmem:[%s271_s6] sm:$0xff] %v1211_v63  ;;  %v1212_v4 = vadd.f32 %v1209_v59, %v1199_v0  ;;  %v969_v5 = vadd.f32 %v968_v57, %v895_v1 }
  0xef   : > { %v1042_v6 = vpop.f32.mrf.mxu1  ;;  %v1369_v7 = vpop.f32.mrf.mxu0 }
  0xf0   : > { %1215 = vst [vmem:[%s271_s6 + $0x8] sm:$0xff] %v1212_v4  ;;  %v1043_v8 = vadd.f32 %v1042_v6, %v969_v5 }
  0xf1   : > { %v1364_v10 = vpop.f32.mrf.mxu1 }
  0xf2   : > { %v1117_v11 = vadd.f32 %v1116_v3, %v1043_v8 }
  0xf3   : > { %v1188_v12 = vpop.f32.mrf.mxu1 }
  0xf4   : > { %v1189_v14 = vadd.f32 %v1188_v12, %v1117_v11 }
  0xf5   : > { %v1374_v15 = vpop.f32.mrf.mxu1 }
  0xf6   : > { %v1200_v16 = vmul.f32 %v1196_v33, %v1189_v14 }
  0xf8   : > { %v1213_v17 = vadd.f32 %v1210_v13, %v1200_v16 }
  0xfa   : > { %1217 = vst.msk [vmem:[%s271_s6 + $0x10] sm:$0xff] %vm1216_vm2, %v1213_v17 }
  0xfb PF: > { %s14_s17 = sadd.s32 1, %s1428_s17   ;;  %s1554_s15 = smov %s1424_s16 }
  0xfc   : > { %p11_p5 = scmp.ge.s32.totalorder %s14_s17, 4   ;;  %s1555_s16 = smov %s1557_s18 }
  0xfe   :  { %13 = sbr.rel (!%p11_p5) target bundleno = 2 (0x2), region = 69 }

// kernel: fused_forward.2
= control target key start
LH: loop header
LB: loop body
LE: loop exit
PB: predicated region body
PF: predicated region fallthrough
CT: control target
= control target key end

     0   :  { %s1378_s12 = smov 0   ;;  %s1380_s13 = smov 0   ;;  %s1474_s0 = inlined_call_operand.vmem [shape: f32[8,8], index: 0, kind: input, shape index: {}]   ;;  %s1475_s1 = inlined_call_operand.vmem [shape: f32[2,8,324], index: 1, kind: input, shape index: {}]   ;;  %s1476_s2 = inlined_call_operand.vmem [shape: f32[2,8,1], index: 2, kind: output, shape index: {0}]   ;;  %s1477_s3 = inlined_call_operand.vmem [shape: f32[2,8,1], index: 3, kind: output, shape index: {1}]  }
   0x1   :  { %s1382_s14 = smov 0  }
   0x2 LB: > { %s26_s15 = sadd.s32 1, %s1350_s13  ;;  %p1257_p0 = scmp.ge.s32.totalorder %s1354_s14, 1  ;;  %s1354_s14 = sphi %s1382_s14, %s14_s14   ;;  %s1350_s13 = sphi %s1380_s13, %s1479_s13   ;;  %s1346_s12 = sphi %s1378_s12, %s1478_s12  }
   0x3   : > { %p28_p1 = scmp.ge.s32.totalorder %s26_s15, 2  ;;  %p159_p2 = scmp.lt.s32.totalorder %s1354_s14, 3 }
   0x5   : > { %s1481_s15 = smov (%p28_p1, %s26_s15), 0  ;;  %p160_p3 = pnand %p1257_p0, %p159_p2 }
   0x6   : > { %p191_p4 = scmp.lt.s32.totalorder (!%p160_p3), %s1346_s12, 1 }
   0x7   : > { %163 = sbr.rel (%p160_p3) target bundleno = 394 (0x18a), region = 28 }
   0xc   : > { %v215_v0 = vld [vmem:[%s1474_s0] sm:$0xff]  ;;  %vm219_vm0 = vcmask 64512   ;;  %v1356_v1 = vmov 0.0   ;;  %s1483_s12 = smov (!%p191_p4, %s1346_s12), 1  ;;  %vm1357_vm1 = vmmov 0   ;;  %vm212_vm2 = vcmask 7168  }
   0xd   : > { %289 = vmatprep.mubr.f32.mxu0 %v1356_v1  ;;  %v221_v2 = vsel %vm219_vm0, %v215_v0, 0  ;;  %375 = vmatprep.mubr.f32.mxu1 %v1356_v1  ;;  %s1305_s18 = smul.u32 24, %s1483_s12  ;;  %s1259_s22 = sshll.u32 %s1483_s12, 3  ;;  %vm1136_vm3 = vcmask 556032  }
   0xe   : > { %v1403_v3 = vand.u32 4294901760, %v221_v2  ;;  %s1449_s25 = scalar_lea.vmem %s1476_s2, %s1259_s22  ;;  %s207_s28 = scalar_lea.vmem %s1477_s3, %s1259_s22 }
   0xf   : > { %s198_s21 = scalar_lea.vmem %s1475_s1, %s1305_s18  ;;  %213 = vst.msk [vmem:[%s1449_s25] sm:$0xff] %vm212_vm2, %v1356_v1  ;;  %214 = vst.msk [vmem:[%s207_s28] sm:$0xff] %vm212_vm2, %v1356_v1 }
  0x10   : > { %v291_v4 = vsub.f32 %v221_v2, %v1403_v3  ;;  %v217_v6 = vld [vmem:[%s198_s21 + $0x8] sm:$0xff]  ;;  %v216_v7 = vld [vmem:[%s198_s21] sm:$0xff]  ;;  %v218_v8 = vld [vmem:[%s198_s21 + $0x10] sm:$0xff] }
  0x11   : > { %v253_v9 = vand.u32 4294901760, %v217_v6  ;;  %v255_v10 = vand.u32 4294901760, %v216_v7  ;;  %v719_v12 = vand.u32 4294901760, %v218_v8 }
  0x12   : > { %v1410_v5 = vand.u32 4294901760, %v291_v4 }
  0x13   : > { %254 = vmatprep.subr.mxu0 %v253_v9  ;;  %v332_v14 = vsub.f32 %v217_v6, %v253_v9  ;;  %v338_v15 = vsub.f32 %v216_v7, %v255_v10  ;;  %v796_v18 = vsub.f32 %v218_v8, %v719_v12 }
  0x14   : > { %v293_v11 = vsub.f32 %v291_v4, %v1410_v5  ;;  %256 = vmatpush1.msra.mxu0 %v255_v10 }
  0x15   : > { %v333_v16 = vand.u32 4294901760, %v332_v14  ;;  %415 = vmatprep.subr.mxu0 %v332_v14  ;;  %v339_v17 = vand.u32 4294901760, %v338_v15  ;;  %v797_v23 = vand.u32 4294901760, %v796_v18 }
  0x16   : > { %v294_v13 = vand.u32 4294901760, %v293_v11  ;;  %v1134_v11 = vld [vmem:[%s1449_s25] sm:$0xff] }
  0x17   : > { %v334_v19 = vsub.f32 %v332_v14, %v333_v16  ;;  %v340_v20 = vsub.f32 %v338_v15, %v339_v17  ;;  %v798_v24 = vsub.f32 %v796_v18, %v797_v23  ;;  %v1144_v14 = vld [vmem:[%s207_s28] sm:$0xff] }
  0x18   : > { %295 = vmatmul.mubr.f32.vlgmr.msra.gmra.mxu0 %v294_v13 }
  0x19   : > { %418 = vmatpush1.msra.mxu0 %v338_v15  ;;  %451 = vmatprep.mubr.f32.mxu0 %v1356_v1  ;;  %v335_v21 = vand.u32 4294901760, %v334_v19  ;;  %v341_v22 = vand.u32 4294901760, %v340_v20  ;;  %v799_v25 = vand.u32 4294901760, %v798_v24 }
  0x1a   : > { %569 = vmatprep.subr.mxu0 %v333_v16 }
  0x1b   : > { %336 = vmatprep.subr.mxu1 %v335_v21 }
  0x1c   : > { %454 = vmatmul.mubr.f32.vlgmr.msra.gmra.mxu0 %v291_v4  ;;  %342 = vmatpush1.msra.mxu1 %v341_v22 }
  0x1d   : > { %573 = vmatpush1.msra.mxu0 %v339_v17  ;;  %606 = vmatprep.mubr.f32.mxu0 %v1356_v1 }
  0x1e   : > { %1275 = vmatprep.subr.mxu0 %v1356_v1  ;;  %377 = vmatmul.mubr.f32.vlgmr.msra.gmra.mxu1 %v1403_v3 }
  0x1f   : > { %491 = vmatprep.subr.mxu1 %v253_v9  ;;  %526 = vmatprep.mubr.f32.mxu1 %v1356_v1 }
  0x20   : > { %493 = vmatpush1.msra.mxu1 %v255_v10  ;;  %608 = vmatmul.mubr.f32.vlgmr.msra.gmra.mxu0 %v1403_v3 }
  0x21   : > { %645 = vmatprep.subr.mxu1 %v253_v9  ;;  %1276 = vmatpush3.msra.mxu0 %v719_v12 }
  0x22   : > { %1277 = vmatprep.mubr.msk.f32.mxu0 %vm1357_vm1, %v1356_v1  ;;  %530 = vmatmul.mubr.f32.vlgmr.msra.gmra.mxu1 %v1410_v5 }
  0x23   : > { %1285 = vmatprep.subr.mxu0 %v1356_v1  ;;  %647 = vmatpush1.msra.mxu1 %v255_v10 }
  0x24   : > { %680 = vmatprep.mubr.f32.mxu1 %v1356_v1  ;;  %1280 = vmatprep.subr.mxu1 %v1356_v1 }
  0x25   : > { %1278 = vmatmul.mubr.f32.vlgmr.msra.gmra.mxu0 %v294_v13 }
  0x26   : > { %1286 = vmatpush3.msra.mxu0 %v796_v18  ;;  %1287 = vmatprep.mubr.msk.f32.mxu0 %vm1357_vm1, %v1356_v1 }
  0x27   : > { %682 = vmatmul.mubr.f32.vlgmr.msra.gmra.mxu1 %v1403_v3  ;;  %1295 = vmatprep.subr.mxu0 %v1356_v1 }
  0x28   : > { %1281 = vmatpush3.msra.mxu1 %v799_v25  ;;  %1282 = vmatprep.mubr.msk.f32.mxu1 %vm1357_vm1, %v1356_v1 }
  0x29   : > { %1290 = vmatprep.subr.mxu1 %v1356_v1  ;;  %1288 = vmatmul.mubr.f32.vlgmr.msra.gmra.mxu0 %v291_v4 }
  0x2a   : > { %1296 = vmatpush3.msra.mxu0 %v797_v23  ;;  %1297 = vmatprep.mubr.msk.f32.mxu0 %vm1357_vm1, %v1356_v1 }
  0x2b   : > { %1283 = vmatmul.mubr.f32.vlgmr.msra.gmra.mxu1 %v1403_v3 }
  0x2c   : > { %1291 = vmatpush3.msra.mxu1 %v719_v12  ;;  %1292 = vmatprep.mubr.msk.f32.mxu1 %vm1357_vm1, %v1356_v1 }
  0x2d   : > { %1300 = vmatprep.subr.mxu1 %v1356_v1  ;;  %1298 = vmatmul.mubr.f32.vlgmr.msra.gmra.mxu0 %v1403_v3 }
  0x2f   : > { %1293 = vmatmul.mubr.f32.vlgmr.msra.gmra.mxu1 %v1410_v5 }
  0x30   : > { %1301 = vmatpush3.msra.mxu1 %v719_v12  ;;  %1302 = vmatprep.mubr.msk.f32.mxu1 %vm1357_vm1, %v1356_v1 }
  0x33   : > { %1303 = vmatmul.mubr.f32.vlgmr.msra.gmra.mxu1 %v1403_v3 }
  0xd8   : > { %v296_v26 = vpop.f32.mrf.mxu0 }
  0xda   : > { %v298_v27 = vpop.f32.mrf.mxu0 }
  0xdc   : > { %v455_v28 = vpop.f32.mrf.mxu0 }
  0xde   : > { %v457_v29 = vpop.f32.mrf.mxu0  ;;  %v378_v30 = vpop.f32.mrf.mxu1 }
  0xdf   : > { %v379_v34 = vadd.f32 %v378_v30, %v296_v26 }
  0xe0   : > { %v380_v31 = vpop.f32.mrf.mxu1  ;;  %v609_v32 = vpop.f32.mrf.mxu0 }
  0xe1   : > { %v381_v33 = vadd.f32 %v380_v31, %v298_v27  ;;  %v456_v40 = vadd.f32 %v455_v28, %v379_v34 }
  0xe2   : > { %v531_v35 = vpop.f32.mrf.mxu1  ;;  %v611_v36 = vpop.f32.mrf.mxu0 }
  0xe3   : > { %v458_v37 = vadd.f32 %v457_v29, %v381_v33  ;;  %v532_v46 = vadd.f32 %v531_v35, %v456_v40 }
  0xe4   : > { %v533_v38 = vpop.f32.mrf.mxu1 }
  0xe5   : > { %v760_v39 = vpop.f32.mrf.mxu0  ;;  %v534_v43 = vadd.f32 %v533_v38, %v458_v37  ;;  %v610_v54 = vadd.f32 %v609_v32, %v532_v46 }
  0xe7   : > { %v683_v41 = vpop.f32.mrf.mxu1  ;;  %v1279_v42 = vpop.f32.mrf.mxu0  ;;  %v612_v50 = vadd.f32 %v611_v36, %v534_v43 }
  0xe8   : > { %v684_v61 = vadd.f32 %v683_v41, %v610_v54 }
  0xe9   : > { %v685_v44 = vpop.f32.mrf.mxu1  ;;  %v910_v45 = vpop.f32.mrf.mxu0 }
  0xea   : > { %v686_v58 = vadd.f32 %v685_v44, %v612_v50  ;;  %v1145_v6 = vmul.f32 %v684_v61, %v684_v61 }
  0xeb   : > { %v836_v47 = vpop.f32.mrf.mxu1  ;;  %v1289_v48 = vpop.f32.mrf.mxu0 }
  0xec   : > { %v837_v49 = vadd.f32 %v836_v47, %v760_v39  ;;  %v1146_v0 = vmul.f32 %v686_v58, %v686_v58  ;;  %v1135_v3 = vadd.f32 %v686_v58, %v684_v61 }
  0xed   : > { %v1284_v51 = vpop.f32.mrf.mxu1  ;;  %v1058_v52 = vpop.f32.mrf.mxu0 }
  0xee   : > { %v911_v53 = vadd.f32 %v910_v45, %v837_v49  ;;  %v1148_v9 = vadd.f32 %v1146_v0, %v1145_v6 }
  0xef   : > { %v984_v55 = vpop.f32.mrf.mxu1  ;;  %v1299_v56 = vpop.f32.mrf.mxu0 }
  0xf0   : > { %v985_v57 = vadd.f32 %v984_v55, %v911_v53 }
  0xf1   : > { %v1294_v59 = vpop.f32.mrf.mxu1 }
  0xf2   : > { %v1059_v60 = vadd.f32 %v1058_v52, %v985_v57 }
  0xf3   : > { %v1130_v62 = vpop.f32.mrf.mxu1 }
  0xf4   : > { %v1131_v63 = vadd.f32 %v1130_v62, %v1059_v60 }
  0xf5   : > { %v1304_v2 = vpop.f32.mrf.mxu1 }
  0xf6   : > { %v1147_v4 = vmul.f32 %v1131_v63, %v1131_v63  ;;  %v1137_v5 = vsel %vm1136_vm3, %v1131_v63, 0.0 }
  0xf7   : > { %v1138_v7 = vadd.f32 %v1137_v5, %v1135_v3 }
  0xf8   : > { %v1149_v8 = vsel %vm1136_vm3, %v1147_v4, 0.0 }
  0xf9   : > { %1139 = vadd.xlane.f32.xlu0 %v1138_v7  ;;  %v1150_v10 = vadd.f32 %v1149_v8, %v1148_v9 }
  0xfd   : > { %1151 = vadd.xlane.f32.xlu0 %v1150_v10 }
 0x182   : > { %v1140_v12 = vpop.xlane.xlu0 %1139 }
 0x183   : > { %v1141_v13 = vadd.f32 %v1140_v12, %v1134_v11 }
 0x185   : > { %1143 = vst.msk [vmem:[%s1449_s25] sm:$0xff] %vm212_vm2, %v1141_v13 }
 0x186   : > { %v1152_v15 = vpop.xlane.xlu0 %1151 }
 0x187   : > { %v1153_v16 = vadd.f32 %v1152_v15, %v1144_v14 }
 0x189   : > { %1154 = vst.msk [vmem:[%s207_s28] sm:$0xff] %vm212_vm2, %v1153_v16 }
 0x18a PF: > { %s14_s14 = sadd.s32 1, %s1354_s14   ;;  %s1478_s12 = smov %s1350_s13 }
 0x18b   : > { %p11_p5 = scmp.ge.s32.totalorder %s14_s14, 4   ;;  %s1479_s13 = smov %s1481_s15 }
 0x18d   :  { %13 = sbr.rel (!%p11_p5) target bundleno = 2 (0x2), region = 74 }

</bundles_post_ra>
